<compile_context>
chip_gen: v5e
topology: v5e:2x2
jax: 0.10.0
libtpu: 0.0.40
codegen_flags: <defaults>
</compile_context>

<pallas_src>
import functools

import jax
import jax.numpy as jnp
import numpy as np
from jax.experimental import pallas as pl
from jax.experimental.pallas import tpu as pltpu

BN_EPS = 4e-5  # nn.BatchNorm2d(..., eps=4e-05) in the module spec


def convblock_kernel(H, W, x_ref, hw_ref, wdw_ref, wpw_ref, prm_ref, o_ref):
    """Fused depthwise-3x3 -> pointwise-1x1 -> BatchNorm -> ReLU.

    x_ref  : (C, L) f32   L = N*H*W; lane p encodes (n, h, w) row-major
    hw_ref : (2, L) i32   row 0 = h(p), row 1 = w(p)
    wdw_ref: (C, 9) f32   depthwise taps, column k = (dy+1)*3 + (dx+1)
    wpw_ref: (C, C) f32   pointwise weights, [out_ch, in_ch]
    prm_ref: (C, 4) f32   columns = [b_dw, b_pw, gamma, beta]
    o_ref  : (C, L) f32
    """
    C, L = x_ref.shape
    x = x_ref[...]
    hh = hw_ref[0:1, :]          # (1, L) int32, row index within the image
    ww = hw_ref[1:2, :]          # (1, L) int32, col index within the image

    # ---- depthwise 3x3 conv (stride 1, pad 1) via lane rotations + masks ----
    acc = x * wdw_ref[:, 4:5]    # center tap (dy = dx = 0)
    for dy in (-1, 0, 1):
        for dx in (-1, 0, 1):
            if dy == 0 and dx == 0:
                continue
            k = (dy + 1) * 3 + (dx + 1)
            shift = (-(dy * W + dx)) % L          # x_sh[p] = x[p + dy*W + dx]
            x_sh = pltpu.roll(x, shift, 1)
            valid = ((hh + dy >= 0) & (hh + dy < H) &
                     (ww + dx >= 0) & (ww + dx < W))
            m = valid.astype(jnp.float32)         # zero outside the image
            acc = acc + x_sh * m * wdw_ref[:, k:k + 1]
    acc = acc + prm_ref[:, 0:1]                   # depthwise bias

    # ---- pointwise 1x1 conv: single MXU matmul over channels ----
    y = jnp.dot(wpw_ref[...], acc, preferred_element_type=jnp.float32)
    y = y + prm_ref[:, 1:2]                       # pointwise bias

    # ---- BatchNorm2d (training mode: batch mean / biased var over N,H,W) ----
    inv_cnt = 1.0 / float(L)
    mean = jnp.sum(y, axis=1, keepdims=True) * inv_cnt           # (C, 1)
    d = y - mean
    var = jnp.sum(d * d, axis=1, keepdims=True) * inv_cnt        # (C, 1)
    yn = d * jax.lax.rsqrt(var + BN_EPS) * prm_ref[:, 2:3] + prm_ref[:, 3:4]

    # ---- ReLU ----
    o_ref[...] = jnp.maximum(yn, 0.0).astype(o_ref.dtype)


def conv_block(x, w_dw, b_dw, w_pw, b_pw, gamma, beta):
    """x: (N, C, H, W) f32.  PyTorch weight layouts:
       w_dw (C,1,3,3), b_dw (C,), w_pw (C,C,1,1), b_pw (C,), gamma/beta (C,)."""
    N, C, H, W = x.shape
    L = N * H * W

    # ---- glue: layout transforms only (no arithmetic) ----
    x2d = jnp.transpose(x, (1, 0, 2, 3)).reshape(C, L)        # channels-major
    q = jnp.arange(L, dtype=jnp.int32) % (H * W)
    hw_idx = jnp.stack([q // W, q % W], axis=0)               # (2, L) int32
    wdw2 = w_dw.reshape(C, 9)                                 # column k = i*3+j
    wpw2 = w_pw[:, :, 0, 0]                                   # (C_out, C_in)
    prm = jnp.stack([b_dw, b_pw, gamma, beta], axis=1)        # (C, 4)

    full2d = lambda a: pl.BlockSpec(a.shape, lambda i: (0, 0))

    flops = L * (2 * 9 * C + 2 * C * C + 6 * C)
    bytes_accessed = 4 * (2 * C * L + 2 * L + C * (9 + C + 4))

    out2d = pl.pallas_call(
        functools.partial(convblock_kernel, H, W),
        out_shape=jax.ShapeDtypeStruct((C, L), jnp.float32),
        grid=(1,),
        in_specs=[full2d(x2d), full2d(hw_idx), full2d(wdw2),
                  full2d(wpw2), full2d(prm)],
        out_specs=pl.BlockSpec((C, L), lambda i: (0, 0)),
        compiler_params=pltpu.CompilerParams(
            dimension_semantics=("arbitrary",)),
        cost_estimate=pl.CostEstimate(
            flops=flops, transcendentals=C, bytes_accessed=bytes_accessed),
    )(x2d, hw_idx, wdw2, wpw2, prm)

    # glue: back to NCHW
    return jnp.transpose(out2d.reshape(C, N, H, W), (1, 0, 2, 3))


def conv_block_reference(x, w_dw, b_dw, w_pw, b_pw, gamma, beta):
    """Pure-JAX reference mirroring the PyTorch module (training-mode BN)."""
    N, C, H, W = x.shape
    dw = jax.lax.conv_general_dilated(
        x, w_dw, window_strides=(1, 1), padding=((1, 1), (1, 1)),
        dimension_numbers=("NCHW", "OIHW", "NCHW"),
        feature_group_count=C) + b_dw.reshape(1, C, 1, 1)
    pw = jax.lax.conv_general_dilated(
        dw, w_pw, window_strides=(1, 1), padding="VALID",
        dimension_numbers=("NCHW", "OIHW", "NCHW")) + b_pw.reshape(1, C, 1, 1)
    mean = jnp.mean(pw, axis=(0, 2, 3), keepdims=True)
    var = jnp.mean((pw - mean) ** 2, axis=(0, 2, 3), keepdims=True)
    y = (pw - mean) * jax.lax.rsqrt(var + BN_EPS)
    y = y * gamma.reshape(1, C, 1, 1) + beta.reshape(1, C, 1, 1)
    return jnp.maximum(y, 0.0)


if __name__ == "__main__":
    N, C, H, W = 2, 4, 16, 16
    key = jax.random.PRNGKey(0)
    k_x, k_wd, k_bd, k_wp, k_bp = jax.random.split(key, 5)

    x = jax.random.normal(k_x, (N, C, H, W), dtype=jnp.float32)

    # Deterministic init mimicking PyTorch Conv2d defaults (uniform +-1/sqrt(fan_in))
    fan_dw = 1 * 3 * 3
    w_dw = jax.random.uniform(k_wd, (C, 1, 3, 3), jnp.float32,
                              -1.0 / np.sqrt(fan_dw), 1.0 / np.sqrt(fan_dw))
    b_dw = jax.random.uniform(k_bd, (C,), jnp.float32,
                              -1.0 / np.sqrt(fan_dw), 1.0 / np.sqrt(fan_dw))
    fan_pw = C * 1 * 1
    w_pw = jax.random.uniform(k_wp, (C, C, 1, 1), jnp.float32,
                              -1.0 / np.sqrt(fan_pw), 1.0 / np.sqrt(fan_pw))
    b_pw = jax.random.uniform(k_bp, (C,), jnp.float32,
                              -1.0 / np.sqrt(fan_pw), 1.0 / np.sqrt(fan_pw))
    gamma = jnp.ones((C,), jnp.float32)    # BatchNorm2d weight init
    beta = jnp.zeros((C,), jnp.float32)    # BatchNorm2d bias init

    out = conv_block(x, w_dw, b_dw, w_pw, b_pw, gamma, beta)
    out = jax.block_until_ready(out)

    ref = conv_block_reference(x, w_dw, b_dw, w_pw, b_pw, gamma, beta)
    np.testing.assert_allclose(np.asarray(out), np.asarray(ref),
                               rtol=1e-4, atol=1e-4)

    print("KERNEL_OK")
</pallas_src>

<mosaic_0001>
module attributes {stable_mosaic.version = 11 : i64} {
  func.func @convblock_kernel(%arg0: i32, %arg1: memref<4x512xf32, #tpu.memory_space<vmem>>, %arg2: memref<2x512xi32, #tpu.memory_space<vmem>>, %arg3: memref<4x9xf32, #tpu.memory_space<vmem>>, %arg4: memref<4x4xf32, #tpu.memory_space<vmem>>, %arg5: memref<4x4xf32, #tpu.memory_space<vmem>>, %arg6: memref<4x512xf32, #tpu.memory_space<vmem>>) attributes {dimension_semantics = [#tpu.dimension_semantics<arbitrary>], iteration_bounds = array<i64: 1>, scalar_prefetch = 0 : i64, scratch_operands = 0 : i64, tpu.core_type = #tpu.core_type<tc>, window_params = [{pipeline_mode = #tpu.pipeline_mode<synchronous>, transform_indices = @transform_0, window_bounds = array<i64: 4, 512>}, {pipeline_mode = #tpu.pipeline_mode<synchronous>, transform_indices = @transform_1, window_bounds = array<i64: 2, 512>}, {pipeline_mode = #tpu.pipeline_mode<synchronous>, transform_indices = @transform_2, window_bounds = array<i64: 4, 9>}, {pipeline_mode = #tpu.pipeline_mode<synchronous>, transform_indices = @transform_3, window_bounds = array<i64: 4, 4>}, {pipeline_mode = #tpu.pipeline_mode<synchronous>, transform_indices = @transform_4, window_bounds = array<i64: 4, 4>}, {pipeline_mode = #tpu.pipeline_mode<synchronous>, transform_indices = @transform_5, window_bounds = array<i64: 4, 512>}]} {
    %c0 = arith.constant 0 : index
    %c0_0 = arith.constant 0 : index
    %0 = vector.load %arg1[%c0, %c0_0] : memref<4x512xf32, #tpu.memory_space<vmem>>, vector<4x512xf32>
    %c0_1 = arith.constant 0 : index
    %c0_2 = arith.constant 0 : index
    %1 = vector.load %arg2[%c0_1, %c0_2] : memref<2x512xi32, #tpu.memory_space<vmem>>, vector<1x512xi32>
    %c1 = arith.constant 1 : index
    %c0_3 = arith.constant 0 : index
    %2 = vector.load %arg2[%c1, %c0_3] : memref<2x512xi32, #tpu.memory_space<vmem>>, vector<1x512xi32>
    %c0_4 = arith.constant 0 : index
    %c4 = arith.constant 4 : index
    %3 = vector.load %arg3[%c0_4, %c4] : memref<4x9xf32, #tpu.memory_space<vmem>>, vector<4x1xf32>
    %4 = vector.broadcast %3 : vector<4x1xf32> to vector<4x512xf32>
    %5 = arith.mulf %0, %4 : vector<4x512xf32>
    %c17_i32 = arith.constant 17 : i32
    %6 = tpu.dynamic_rotate %0 by %c17_i32 dim 1 : vector<4x512xf32>, i32 -> vector<4x512xf32>
    %c-1_i32 = arith.constant -1 : i32
    %7 = vector.broadcast %c-1_i32 : i32 to vector<1x512xi32>
    %8 = arith.addi %1, %7 : vector<1x512xi32>
    %c0_i32 = arith.constant 0 : i32
    %9 = vector.broadcast %c0_i32 : i32 to vector<1x512xi32>
    %10 = arith.cmpi sge, %8, %9 : vector<1x512xi32>
    %c-1_i32_5 = arith.constant -1 : i32
    %11 = vector.broadcast %c-1_i32_5 : i32 to vector<1x512xi32>
    %12 = arith.addi %1, %11 : vector<1x512xi32>
    %c16_i32 = arith.constant 16 : i32
    %13 = vector.broadcast %c16_i32 : i32 to vector<1x512xi32>
    %14 = arith.cmpi slt, %12, %13 : vector<1x512xi32>
    %15 = arith.andi %10, %14 : vector<1x512xi1>
    %c-1_i32_6 = arith.constant -1 : i32
    %16 = vector.broadcast %c-1_i32_6 : i32 to vector<1x512xi32>
    %17 = arith.addi %2, %16 : vector<1x512xi32>
    %c0_i32_7 = arith.constant 0 : i32
    %18 = vector.broadcast %c0_i32_7 : i32 to vector<1x512xi32>
    %19 = arith.cmpi sge, %17, %18 : vector<1x512xi32>
    %20 = arith.andi %15, %19 : vector<1x512xi1>
    %c-1_i32_8 = arith.constant -1 : i32
    %21 = vector.broadcast %c-1_i32_8 : i32 to vector<1x512xi32>
    %22 = arith.addi %2, %21 : vector<1x512xi32>
    %c16_i32_9 = arith.constant 16 : i32
    %23 = vector.broadcast %c16_i32_9 : i32 to vector<1x512xi32>
    %24 = arith.cmpi slt, %22, %23 : vector<1x512xi32>
    %25 = arith.andi %20, %24 : vector<1x512xi1>
    %26 = arith.extui %25 : vector<1x512xi1> to vector<1x512xi32>
    %27 = arith.sitofp %26 : vector<1x512xi32> to vector<1x512xf32>
    %28 = vector.broadcast %27 : vector<1x512xf32> to vector<4x512xf32>
    %29 = arith.mulf %6, %28 : vector<4x512xf32>
    %c0_10 = arith.constant 0 : index
    %c0_11 = arith.constant 0 : index
    %30 = vector.load %arg3[%c0_10, %c0_11] : memref<4x9xf32, #tpu.memory_space<vmem>>, vector<4x1xf32>
    %31 = vector.broadcast %30 : vector<4x1xf32> to vector<4x512xf32>
    %32 = arith.mulf %29, %31 : vector<4x512xf32>
    %33 = arith.addf %5, %32 : vector<4x512xf32>
    %c16_i32_12 = arith.constant 16 : i32
    %34 = tpu.dynamic_rotate %0 by %c16_i32_12 dim 1 : vector<4x512xf32>, i32 -> vector<4x512xf32>
    %c-1_i32_13 = arith.constant -1 : i32
    %35 = vector.broadcast %c-1_i32_13 : i32 to vector<1x512xi32>
    %36 = arith.addi %1, %35 : vector<1x512xi32>
    %c0_i32_14 = arith.constant 0 : i32
    %37 = vector.broadcast %c0_i32_14 : i32 to vector<1x512xi32>
    %38 = arith.cmpi sge, %36, %37 : vector<1x512xi32>
    %c-1_i32_15 = arith.constant -1 : i32
    %39 = vector.broadcast %c-1_i32_15 : i32 to vector<1x512xi32>
    %40 = arith.addi %1, %39 : vector<1x512xi32>
    %c16_i32_16 = arith.constant 16 : i32
    %41 = vector.broadcast %c16_i32_16 : i32 to vector<1x512xi32>
    %42 = arith.cmpi slt, %40, %41 : vector<1x512xi32>
    %43 = arith.andi %38, %42 : vector<1x512xi1>
    %c0_i32_17 = arith.constant 0 : i32
    %44 = vector.broadcast %c0_i32_17 : i32 to vector<1x512xi32>
    %45 = arith.addi %2, %44 : vector<1x512xi32>
    %c0_i32_18 = arith.constant 0 : i32
    %46 = vector.broadcast %c0_i32_18 : i32 to vector<1x512xi32>
    %47 = arith.cmpi sge, %45, %46 : vector<1x512xi32>
    %48 = arith.andi %43, %47 : vector<1x512xi1>
    %c0_i32_19 = arith.constant 0 : i32
    %49 = vector.broadcast %c0_i32_19 : i32 to vector<1x512xi32>
    %50 = arith.addi %2, %49 : vector<1x512xi32>
    %c16_i32_20 = arith.constant 16 : i32
    %51 = vector.broadcast %c16_i32_20 : i32 to vector<1x512xi32>
    %52 = arith.cmpi slt, %50, %51 : vector<1x512xi32>
    %53 = arith.andi %48, %52 : vector<1x512xi1>
    %54 = arith.extui %53 : vector<1x512xi1> to vector<1x512xi32>
    %55 = arith.sitofp %54 : vector<1x512xi32> to vector<1x512xf32>
    %56 = vector.broadcast %55 : vector<1x512xf32> to vector<4x512xf32>
    %57 = arith.mulf %34, %56 : vector<4x512xf32>
    %c0_21 = arith.constant 0 : index
    %c1_22 = arith.constant 1 : index
    %58 = vector.load %arg3[%c0_21, %c1_22] : memref<4x9xf32, #tpu.memory_space<vmem>>, vector<4x1xf32>
    %59 = vector.broadcast %58 : vector<4x1xf32> to vector<4x512xf32>
    %60 = arith.mulf %57, %59 : vector<4x512xf32>
    %61 = arith.addf %33, %60 : vector<4x512xf32>
    %c15_i32 = arith.constant 15 : i32
    %62 = tpu.dynamic_rotate %0 by %c15_i32 dim 1 : vector<4x512xf32>, i32 -> vector<4x512xf32>
    %c-1_i32_23 = arith.constant -1 : i32
    %63 = vector.broadcast %c-1_i32_23 : i32 to vector<1x512xi32>
    %64 = arith.addi %1, %63 : vector<1x512xi32>
    %c0_i32_24 = arith.constant 0 : i32
    %65 = vector.broadcast %c0_i32_24 : i32 to vector<1x512xi32>
    %66 = arith.cmpi sge, %64, %65 : vector<1x512xi32>
    %c-1_i32_25 = arith.constant -1 : i32
    %67 = vector.broadcast %c-1_i32_25 : i32 to vector<1x512xi32>
    %68 = arith.addi %1, %67 : vector<1x512xi32>
    %c16_i32_26 = arith.constant 16 : i32
    %69 = vector.broadcast %c16_i32_26 : i32 to vector<1x512xi32>
    %70 = arith.cmpi slt, %68, %69 : vector<1x512xi32>
    %71 = arith.andi %66, %70 : vector<1x512xi1>
    %c1_i32 = arith.constant 1 : i32
    %72 = vector.broadcast %c1_i32 : i32 to vector<1x512xi32>
    %73 = arith.addi %2, %72 : vector<1x512xi32>
    %c0_i32_27 = arith.constant 0 : i32
    %74 = vector.broadcast %c0_i32_27 : i32 to vector<1x512xi32>
    %75 = arith.cmpi sge, %73, %74 : vector<1x512xi32>
    %76 = arith.andi %71, %75 : vector<1x512xi1>
    %c1_i32_28 = arith.constant 1 : i32
    %77 = vector.broadcast %c1_i32_28 : i32 to vector<1x512xi32>
    %78 = arith.addi %2, %77 : vector<1x512xi32>
    %c16_i32_29 = arith.constant 16 : i32
    %79 = vector.broadcast %c16_i32_29 : i32 to vector<1x512xi32>
    %80 = arith.cmpi slt, %78, %79 : vector<1x512xi32>
    %81 = arith.andi %76, %80 : vector<1x512xi1>
    %82 = arith.extui %81 : vector<1x512xi1> to vector<1x512xi32>
    %83 = arith.sitofp %82 : vector<1x512xi32> to vector<1x512xf32>
    %84 = vector.broadcast %83 : vector<1x512xf32> to vector<4x512xf32>
    %85 = arith.mulf %62, %84 : vector<4x512xf32>
    %c0_30 = arith.constant 0 : index
    %c2 = arith.constant 2 : index
    %86 = vector.load %arg3[%c0_30, %c2] : memref<4x9xf32, #tpu.memory_space<vmem>>, vector<4x1xf32>
    %87 = vector.broadcast %86 : vector<4x1xf32> to vector<4x512xf32>
    %88 = arith.mulf %85, %87 : vector<4x512xf32>
    %89 = arith.addf %61, %88 : vector<4x512xf32>
    %c1_i32_31 = arith.constant 1 : i32
    %90 = tpu.dynamic_rotate %0 by %c1_i32_31 dim 1 : vector<4x512xf32>, i32 -> vector<4x512xf32>
    %c0_i32_32 = arith.constant 0 : i32
    %91 = vector.broadcast %c0_i32_32 : i32 to vector<1x512xi32>
    %92 = arith.addi %1, %91 : vector<1x512xi32>
    %c0_i32_33 = arith.constant 0 : i32
    %93 = vector.broadcast %c0_i32_33 : i32 to vector<1x512xi32>
    %94 = arith.cmpi sge, %92, %93 : vector<1x512xi32>
    %c0_i32_34 = arith.constant 0 : i32
    %95 = vector.broadcast %c0_i32_34 : i32 to vector<1x512xi32>
    %96 = arith.addi %1, %95 : vector<1x512xi32>
    %c16_i32_35 = arith.constant 16 : i32
    %97 = vector.broadcast %c16_i32_35 : i32 to vector<1x512xi32>
    %98 = arith.cmpi slt, %96, %97 : vector<1x512xi32>
    %99 = arith.andi %94, %98 : vector<1x512xi1>
    %c-1_i32_36 = arith.constant -1 : i32
    %100 = vector.broadcast %c-1_i32_36 : i32 to vector<1x512xi32>
    %101 = arith.addi %2, %100 : vector<1x512xi32>
    %c0_i32_37 = arith.constant 0 : i32
    %102 = vector.broadcast %c0_i32_37 : i32 to vector<1x512xi32>
    %103 = arith.cmpi sge, %101, %102 : vector<1x512xi32>
    %104 = arith.andi %99, %103 : vector<1x512xi1>
    %c-1_i32_38 = arith.constant -1 : i32
    %105 = vector.broadcast %c-1_i32_38 : i32 to vector<1x512xi32>
    %106 = arith.addi %2, %105 : vector<1x512xi32>
    %c16_i32_39 = arith.constant 16 : i32
    %107 = vector.broadcast %c16_i32_39 : i32 to vector<1x512xi32>
    %108 = arith.cmpi slt, %106, %107 : vector<1x512xi32>
    %109 = arith.andi %104, %108 : vector<1x512xi1>
    %110 = arith.extui %109 : vector<1x512xi1> to vector<1x512xi32>
    %111 = arith.sitofp %110 : vector<1x512xi32> to vector<1x512xf32>
    %112 = vector.broadcast %111 : vector<1x512xf32> to vector<4x512xf32>
    %113 = arith.mulf %90, %112 : vector<4x512xf32>
    %c0_40 = arith.constant 0 : index
    %c3 = arith.constant 3 : index
    %114 = vector.load %arg3[%c0_40, %c3] : memref<4x9xf32, #tpu.memory_space<vmem>>, vector<4x1xf32>
    %115 = vector.broadcast %114 : vector<4x1xf32> to vector<4x512xf32>
    %116 = arith.mulf %113, %115 : vector<4x512xf32>
    %117 = arith.addf %89, %116 : vector<4x512xf32>
    %c511_i32 = arith.constant 511 : i32
    %118 = tpu.dynamic_rotate %0 by %c511_i32 dim 1 : vector<4x512xf32>, i32 -> vector<4x512xf32>
    %c0_i32_41 = arith.constant 0 : i32
    %119 = vector.broadcast %c0_i32_41 : i32 to vector<1x512xi32>
    %120 = arith.addi %1, %119 : vector<1x512xi32>
    %c0_i32_42 = arith.constant 0 : i32
    %121 = vector.broadcast %c0_i32_42 : i32 to vector<1x512xi32>
    %122 = arith.cmpi sge, %120, %121 : vector<1x512xi32>
    %c0_i32_43 = arith.constant 0 : i32
    %123 = vector.broadcast %c0_i32_43 : i32 to vector<1x512xi32>
    %124 = arith.addi %1, %123 : vector<1x512xi32>
    %c16_i32_44 = arith.constant 16 : i32
    %125 = vector.broadcast %c16_i32_44 : i32 to vector<1x512xi32>
    %126 = arith.cmpi slt, %124, %125 : vector<1x512xi32>
    %127 = arith.andi %122, %126 : vector<1x512xi1>
    %c1_i32_45 = arith.constant 1 : i32
    %128 = vector.broadcast %c1_i32_45 : i32 to vector<1x512xi32>
    %129 = arith.addi %2, %128 : vector<1x512xi32>
    %c0_i32_46 = arith.constant 0 : i32
    %130 = vector.broadcast %c0_i32_46 : i32 to vector<1x512xi32>
    %131 = arith.cmpi sge, %129, %130 : vector<1x512xi32>
    %132 = arith.andi %127, %131 : vector<1x512xi1>
    %c1_i32_47 = arith.constant 1 : i32
    %133 = vector.broadcast %c1_i32_47 : i32 to vector<1x512xi32>
    %134 = arith.addi %2, %133 : vector<1x512xi32>
    %c16_i32_48 = arith.constant 16 : i32
    %135 = vector.broadcast %c16_i32_48 : i32 to vector<1x512xi32>
    %136 = arith.cmpi slt, %134, %135 : vector<1x512xi32>
    %137 = arith.andi %132, %136 : vector<1x512xi1>
    %138 = arith.extui %137 : vector<1x512xi1> to vector<1x512xi32>
    %139 = arith.sitofp %138 : vector<1x512xi32> to vector<1x512xf32>
    %140 = vector.broadcast %139 : vector<1x512xf32> to vector<4x512xf32>
    %141 = arith.mulf %118, %140 : vector<4x512xf32>
    %c0_49 = arith.constant 0 : index
    %c5 = arith.constant 5 : index
    %142 = vector.load %arg3[%c0_49, %c5] : memref<4x9xf32, #tpu.memory_space<vmem>>, vector<4x1xf32>
    %143 = vector.broadcast %142 : vector<4x1xf32> to vector<4x512xf32>
    %144 = arith.mulf %141, %143 : vector<4x512xf32>
    %145 = arith.addf %117, %144 : vector<4x512xf32>
    %c497_i32 = arith.constant 497 : i32
    %146 = tpu.dynamic_rotate %0 by %c497_i32 dim 1 : vector<4x512xf32>, i32 -> vector<4x512xf32>
    %c1_i32_50 = arith.constant 1 : i32
    %147 = vector.broadcast %c1_i32_50 : i32 to vector<1x512xi32>
    %148 = arith.addi %1, %147 : vector<1x512xi32>
    %c0_i32_51 = arith.constant 0 : i32
    %149 = vector.broadcast %c0_i32_51 : i32 to vector<1x512xi32>
    %150 = arith.cmpi sge, %148, %149 : vector<1x512xi32>
    %c1_i32_52 = arith.constant 1 : i32
    %151 = vector.broadcast %c1_i32_52 : i32 to vector<1x512xi32>
    %152 = arith.addi %1, %151 : vector<1x512xi32>
    %c16_i32_53 = arith.constant 16 : i32
    %153 = vector.broadcast %c16_i32_53 : i32 to vector<1x512xi32>
    %154 = arith.cmpi slt, %152, %153 : vector<1x512xi32>
    %155 = arith.andi %150, %154 : vector<1x512xi1>
    %c-1_i32_54 = arith.constant -1 : i32
    %156 = vector.broadcast %c-1_i32_54 : i32 to vector<1x512xi32>
    %157 = arith.addi %2, %156 : vector<1x512xi32>
    %c0_i32_55 = arith.constant 0 : i32
    %158 = vector.broadcast %c0_i32_55 : i32 to vector<1x512xi32>
    %159 = arith.cmpi sge, %157, %158 : vector<1x512xi32>
    %160 = arith.andi %155, %159 : vector<1x512xi1>
    %c-1_i32_56 = arith.constant -1 : i32
    %161 = vector.broadcast %c-1_i32_56 : i32 to vector<1x512xi32>
    %162 = arith.addi %2, %161 : vector<1x512xi32>
    %c16_i32_57 = arith.constant 16 : i32
    %163 = vector.broadcast %c16_i32_57 : i32 to vector<1x512xi32>
    %164 = arith.cmpi slt, %162, %163 : vector<1x512xi32>
    %165 = arith.andi %160, %164 : vector<1x512xi1>
    %166 = arith.extui %165 : vector<1x512xi1> to vector<1x512xi32>
    %167 = arith.sitofp %166 : vector<1x512xi32> to vector<1x512xf32>
    %168 = vector.broadcast %167 : vector<1x512xf32> to vector<4x512xf32>
    %169 = arith.mulf %146, %168 : vector<4x512xf32>
    %c0_58 = arith.constant 0 : index
    %c6 = arith.constant 6 : index
    %170 = vector.load %arg3[%c0_58, %c6] : memref<4x9xf32, #tpu.memory_space<vmem>>, vector<4x1xf32>
    %171 = vector.broadcast %170 : vector<4x1xf32> to vector<4x512xf32>
    %172 = arith.mulf %169, %171 : vector<4x512xf32>
    %173 = arith.addf %145, %172 : vector<4x512xf32>
    %c496_i32 = arith.constant 496 : i32
    %174 = tpu.dynamic_rotate %0 by %c496_i32 dim 1 : vector<4x512xf32>, i32 -> vector<4x512xf32>
    %c1_i32_59 = arith.constant 1 : i32
    %175 = vector.broadcast %c1_i32_59 : i32 to vector<1x512xi32>
    %176 = arith.addi %1, %175 : vector<1x512xi32>
    %c0_i32_60 = arith.constant 0 : i32
    %177 = vector.broadcast %c0_i32_60 : i32 to vector<1x512xi32>
    %178 = arith.cmpi sge, %176, %177 : vector<1x512xi32>
    %c1_i32_61 = arith.constant 1 : i32
    %179 = vector.broadcast %c1_i32_61 : i32 to vector<1x512xi32>
    %180 = arith.addi %1, %179 : vector<1x512xi32>
    %c16_i32_62 = arith.constant 16 : i32
    %181 = vector.broadcast %c16_i32_62 : i32 to vector<1x512xi32>
    %182 = arith.cmpi slt, %180, %181 : vector<1x512xi32>
    %183 = arith.andi %178, %182 : vector<1x512xi1>
    %c0_i32_63 = arith.constant 0 : i32
    %184 = vector.broadcast %c0_i32_63 : i32 to vector<1x512xi32>
    %185 = arith.addi %2, %184 : vector<1x512xi32>
    %c0_i32_64 = arith.constant 0 : i32
    %186 = vector.broadcast %c0_i32_64 : i32 to vector<1x512xi32>
    %187 = arith.cmpi sge, %185, %186 : vector<1x512xi32>
    %188 = arith.andi %183, %187 : vector<1x512xi1>
    %c0_i32_65 = arith.constant 0 : i32
    %189 = vector.broadcast %c0_i32_65 : i32 to vector<1x512xi32>
    %190 = arith.addi %2, %189 : vector<1x512xi32>
    %c16_i32_66 = arith.constant 16 : i32
    %191 = vector.broadcast %c16_i32_66 : i32 to vector<1x512xi32>
    %192 = arith.cmpi slt, %190, %191 : vector<1x512xi32>
    %193 = arith.andi %188, %192 : vector<1x512xi1>
    %194 = arith.extui %193 : vector<1x512xi1> to vector<1x512xi32>
    %195 = arith.sitofp %194 : vector<1x512xi32> to vector<1x512xf32>
    %196 = vector.broadcast %195 : vector<1x512xf32> to vector<4x512xf32>
    %197 = arith.mulf %174, %196 : vector<4x512xf32>
    %c0_67 = arith.constant 0 : index
    %c7 = arith.constant 7 : index
    %198 = vector.load %arg3[%c0_67, %c7] : memref<4x9xf32, #tpu.memory_space<vmem>>, vector<4x1xf32>
    %199 = vector.broadcast %198 : vector<4x1xf32> to vector<4x512xf32>
    %200 = arith.mulf %197, %199 : vector<4x512xf32>
    %201 = arith.addf %173, %200 : vector<4x512xf32>
    %c495_i32 = arith.constant 495 : i32
    %202 = tpu.dynamic_rotate %0 by %c495_i32 dim 1 : vector<4x512xf32>, i32 -> vector<4x512xf32>
    %c1_i32_68 = arith.constant 1 : i32
    %203 = vector.broadcast %c1_i32_68 : i32 to vector<1x512xi32>
    %204 = arith.addi %1, %203 : vector<1x512xi32>
    %c0_i32_69 = arith.constant 0 : i32
    %205 = vector.broadcast %c0_i32_69 : i32 to vector<1x512xi32>
    %206 = arith.cmpi sge, %204, %205 : vector<1x512xi32>
    %c1_i32_70 = arith.constant 1 : i32
    %207 = vector.broadcast %c1_i32_70 : i32 to vector<1x512xi32>
    %208 = arith.addi %1, %207 : vector<1x512xi32>
    %c16_i32_71 = arith.constant 16 : i32
    %209 = vector.broadcast %c16_i32_71 : i32 to vector<1x512xi32>
    %210 = arith.cmpi slt, %208, %209 : vector<1x512xi32>
    %211 = arith.andi %206, %210 : vector<1x512xi1>
    %c1_i32_72 = arith.constant 1 : i32
    %212 = vector.broadcast %c1_i32_72 : i32 to vector<1x512xi32>
    %213 = arith.addi %2, %212 : vector<1x512xi32>
    %c0_i32_73 = arith.constant 0 : i32
    %214 = vector.broadcast %c0_i32_73 : i32 to vector<1x512xi32>
    %215 = arith.cmpi sge, %213, %214 : vector<1x512xi32>
    %216 = arith.andi %211, %215 : vector<1x512xi1>
    %c1_i32_74 = arith.constant 1 : i32
    %217 = vector.broadcast %c1_i32_74 : i32 to vector<1x512xi32>
    %218 = arith.addi %2, %217 : vector<1x512xi32>
    %c16_i32_75 = arith.constant 16 : i32
    %219 = vector.broadcast %c16_i32_75 : i32 to vector<1x512xi32>
    %220 = arith.cmpi slt, %218, %219 : vector<1x512xi32>
    %221 = arith.andi %216, %220 : vector<1x512xi1>
    %222 = arith.extui %221 : vector<1x512xi1> to vector<1x512xi32>
    %223 = arith.sitofp %222 : vector<1x512xi32> to vector<1x512xf32>
    %224 = vector.broadcast %223 : vector<1x512xf32> to vector<4x512xf32>
    %225 = arith.mulf %202, %224 : vector<4x512xf32>
    %c0_76 = arith.constant 0 : index
    %c8 = arith.constant 8 : index
    %226 = vector.load %arg3[%c0_76, %c8] : memref<4x9xf32, #tpu.memory_space<vmem>>, vector<4x1xf32>
    %227 = vector.broadcast %226 : vector<4x1xf32> to vector<4x512xf32>
    %228 = arith.mulf %225, %227 : vector<4x512xf32>
    %229 = arith.addf %201, %228 : vector<4x512xf32>
    %c0_77 = arith.constant 0 : index
    %c0_78 = arith.constant 0 : index
    %230 = vector.load %arg5[%c0_77, %c0_78] : memref<4x4xf32, #tpu.memory_space<vmem>>, vector<4x1xf32>
    %231 = vector.broadcast %230 : vector<4x1xf32> to vector<4x512xf32>
    %232 = arith.addf %229, %231 : vector<4x512xf32>
    %c0_79 = arith.constant 0 : index
    %c0_80 = arith.constant 0 : index
    %233 = vector.load %arg4[%c0_79, %c0_80] : memref<4x4xf32, #tpu.memory_space<vmem>>, vector<4x4xf32>
    %cst = arith.constant dense<0.000000e+00> : vector<4x512xf32>
    %234 = tpu.matmul %233, %232, %cst {dimension_numbers = #tpu.dot_dimension_numbers<[1], [0], [0], [1], [0, 0, 1, 1], [], []>} : vector<4x4xf32>, vector<4x512xf32>, vector<4x512xf32> -> vector<4x512xf32>
    %c0_81 = arith.constant 0 : index
    %c1_82 = arith.constant 1 : index
    %235 = vector.load %arg5[%c0_81, %c1_82] : memref<4x4xf32, #tpu.memory_space<vmem>>, vector<4x1xf32>
    %236 = vector.broadcast %235 : vector<4x1xf32> to vector<4x512xf32>
    %237 = arith.addf %234, %236 : vector<4x512xf32>
    %cst_83 = arith.constant dense<0.000000e+00> : vector<4xf32>
    %238 = vector.multi_reduction <add>, %237, %cst_83 [1] : vector<4x512xf32> to vector<4xf32>
    %239 = vector.shape_cast %238 : vector<4xf32> to vector<4x1xf32>
    %cst_84 = arith.constant 0.001953125 : f32
    %240 = vector.broadcast %cst_84 : f32 to vector<4x1xf32>
    %241 = arith.mulf %239, %240 : vector<4x1xf32>
    %242 = vector.broadcast %241 : vector<4x1xf32> to vector<4x512xf32>
    %243 = arith.subf %237, %242 : vector<4x512xf32>
    %244 = arith.mulf %243, %243 : vector<4x512xf32>
    %cst_85 = arith.constant dense<0.000000e+00> : vector<4xf32>
    %245 = vector.multi_reduction <add>, %244, %cst_85 [1] : vector<4x512xf32> to vector<4xf32>
    %246 = vector.shape_cast %245 : vector<4xf32> to vector<4x1xf32>
    %cst_86 = arith.constant 0.001953125 : f32
    %247 = vector.broadcast %cst_86 : f32 to vector<4x1xf32>
    %248 = arith.mulf %246, %247 : vector<4x1xf32>
    %cst_87 = arith.constant 4.000000e-05 : f32
    %249 = vector.broadcast %cst_87 : f32 to vector<4x1xf32>
    %250 = arith.addf %248, %249 : vector<4x1xf32>
    %251 = math.rsqrt %250 : vector<4x1xf32>
    %252 = vector.broadcast %251 : vector<4x1xf32> to vector<4x512xf32>
    %253 = arith.mulf %243, %252 : vector<4x512xf32>
    %c0_88 = arith.constant 0 : index
    %c2_89 = arith.constant 2 : index
    %254 = vector.load %arg5[%c0_88, %c2_89] : memref<4x4xf32, #tpu.memory_space<vmem>>, vector<4x1xf32>
    %255 = vector.broadcast %254 : vector<4x1xf32> to vector<4x512xf32>
    %256 = arith.mulf %253, %255 : vector<4x512xf32>
    %c0_90 = arith.constant 0 : index
    %c3_91 = arith.constant 3 : index
    %257 = vector.load %arg5[%c0_90, %c3_91] : memref<4x4xf32, #tpu.memory_space<vmem>>, vector<4x1xf32>
    %258 = vector.broadcast %257 : vector<4x1xf32> to vector<4x512xf32>
    %259 = arith.addf %256, %258 : vector<4x512xf32>
    %cst_92 = arith.constant 0.000000e+00 : f32
    %260 = vector.broadcast %cst_92 : f32 to vector<4x512xf32>
    %261 = arith.maximumf %259, %260 : vector<4x512xf32>
    %c0_93 = arith.constant 0 : index
    %c0_94 = arith.constant 0 : index
    %262 = vector.load %arg6[%c0_93, %c0_94] : memref<4x512xf32, #tpu.memory_space<vmem>>, vector<4x512xf32>
    tpu.vector_store %arg6[%c0_93, %c0_94], %261 {strides = array<i32>} : memref<4x512xf32, #tpu.memory_space<vmem>>, vector<4x512xf32>,
    return
  }
  func.func @transform_0(%arg0: i32) -> (i32, i32) {
    %c0_i32 = arith.constant 0 : i32
    %c0_i32_0 = arith.constant 0 : i32
    %c0_i32_1 = arith.constant 0 : i32
    return %c0_i32, %c0_i32_0 : i32, i32
  }
  func.func @transform_1(%arg0: i32) -> (i32, i32) {
    %c0_i32 = arith.constant 0 : i32
    %c0_i32_0 = arith.constant 0 : i32
    %c0_i32_1 = arith.constant 0 : i32
    return %c0_i32, %c0_i32_0 : i32, i32
  }
  func.func @transform_2(%arg0: i32) -> (i32, i32) {
    %c0_i32 = arith.constant 0 : i32
    %c0_i32_0 = arith.constant 0 : i32
    %c0_i32_1 = arith.constant 0 : i32
    return %c0_i32, %c0_i32_0 : i32, i32
  }
  func.func @transform_3(%arg0: i32) -> (i32, i32) {
    %c0_i32 = arith.constant 0 : i32
    %c0_i32_0 = arith.constant 0 : i32
    %c0_i32_1 = arith.constant 0 : i32
    return %c0_i32, %c0_i32_0 : i32, i32
  }
  func.func @transform_4(%arg0: i32) -> (i32, i32) {
    %c0_i32 = arith.constant 0 : i32
    %c0_i32_0 = arith.constant 0 : i32
    %c0_i32_1 = arith.constant 0 : i32
    return %c0_i32, %c0_i32_0 : i32, i32
  }
  func.func @transform_5(%arg0: i32) -> (i32, i32) {
    %c0_i32 = arith.constant 0 : i32
    %c0_i32_0 = arith.constant 0 : i32
    %c0_i32_1 = arith.constant 0 : i32
    return %c0_i32, %c0_i32_0 : i32, i32
  }
}

</mosaic_0001>

<bundles_post_ra>
// kernel: tpu_custom_call.1
= control target key start
LH: loop header
LB: loop body
LE: loop exit
PB: predicated region body
PF: predicated region fallthrough
CT: control target
= control target key end

     0   :  { %10 = vsyncpa [#allocation3], 0  ;;  %s1449_s0 = inlined_call_operand.hbm [shape: f32[4,512], index: 0, kind: input, shape index: {}]   ;;  %s1450_s1 = inlined_call_operand.hbm [shape: s32[2,512], index: 1, kind: input, shape index: {}]   ;;  %s1451_s2 = inlined_call_operand.hbm [shape: f32[4,9], index: 2, kind: input, shape index: {}]   ;;  %s1452_s3 = inlined_call_operand.hbm [shape: f32[4,4], index: 3, kind: input, shape index: {}]   ;;  %s1453_s4 = inlined_call_operand.hbm [shape: f32[4,4], index: 4, kind: input, shape index: {}]   ;;  %s1454_s5 = inlined_call_operand.hbm [shape: f32[4,512], index: 5, kind: output, shape index: {}]  }
   0x1   :  { %11 = vsyncpa [#allocation6], 0 }
   0x2   :  { %12 = vsyncpa [#allocation9], 0  ;;  %s30_s20 = sshll.u32 %s1450_s1, 4  ;;  %s31_s20 = int_to_ptr.hbm [resolvable:$true] %s30_s20 }
   0x3   :  { %13 = vsyncpa [#allocation4], 0  ;;  %s1056_s21 = smov [#allocation5]   ;;  %s52_s25 = sshll.u32 %s1452_s3, 4  ;;  %s53_s25 = int_to_ptr.hbm [resolvable:$true] %s52_s25 }
   0x4   :  { %s32_s22 = sshll.u32 %s1056_s21, 4  ;;  %s1057_s26 = smov [#allocation8]   ;;  %s33_s22 = int_to_ptr.vmem [resolvable:$true] %s32_s22 }
   0x5   :  { %35 = dma.hbm_to_vmem [thread:$0]  %s31_s20, 128, %s33_s22, [#allocation6]  }
   0x6   :  { %s54_s27 = sshll.u32 %s1057_s26, 4  ;;  %s19_s30 = sshll.u32 %s1449_s0, 4  ;;  %s55_s27 = int_to_ptr.vmem [resolvable:$true] %s54_s27  ;;  %s20_s30 = int_to_ptr.hbm [resolvable:$true] %s19_s30 }
   0x7   :  { %57 = dma.hbm_to_vmem [thread:$0]  %s53_s25, 64, %s55_s27, [#allocation9]  }
   0x8   :  { %s41_s7 = sshll.u32 %s1451_s2, 4  ;;  %s1058_s8 = smov [#allocation2]   ;;  %s42_s7 = int_to_ptr.hbm [resolvable:$true] %s41_s7 }
   0x9   :  { %s21_s9 = sshll.u32 %s1058_s8, 4  ;;  %s1059_s3 = smov [#allocation7]   ;;  %s22_s9 = int_to_ptr.vmem [resolvable:$true] %s21_s9 }
   0xa   :  { %24 = dma.hbm_to_vmem [thread:$0]  %s20_s30, 256, %s22_s9, [#allocation3]  }
   0xb   :  { %s43_s10 = sshll.u32 %s1059_s3, 4  ;;  %s63_s13 = sshll.u32 %s1453_s4, 4  ;;  %s44_s10 = int_to_ptr.vmem [resolvable:$true] %s43_s10  ;;  %s64_s13 = int_to_ptr.hbm [resolvable:$true] %s63_s13 }
   0xc   :  { %46 = dma.hbm_to_vmem [thread:$0]  %s42_s7, 64, %s44_s10, [#allocation6]  }
   0xd   :  { %s1060_s0 = smov [#allocation10]  }
   0xe   :  { %s65_s14 = sshll.u32 %s1060_s0, 4  ;;  %s66_s14 = int_to_ptr.vmem [resolvable:$true] %s65_s14 }
   0xf   :  { %68 = dma.hbm_to_vmem [thread:$0]  %s64_s13, 64, %s66_s14, [#allocation9]  }
  0x10   :  { %1048 = dma.done.wait [#allocation3], 256  }
  0x11   :  { %1049 = vsyncadd [#allocation3], 4294967040 }
  0x12   :  { %1050 = dma.done.wait [#allocation6], 192  }
  0x13   :  { %1051 = vsyncadd [#allocation6], 4294967104 }
  0x14   :  { %1052 = dma.done.wait [#allocation9], 128  }
  0x15   :  { %1053 = vsyncadd [#allocation9], 4294967168  ;;  %v1061_v0 = vmov 0   ;;  %v1062_v1 = vmov 4   ;;  %v1127_v2 = vld [vmem:[#allocation2 + $0x8] sm:$0xff]  ;;  %v1129_v3 = vld [vmem:[#allocation2] sm:$0xff]  ;;  %v127_v57 = vlaneseq }
  0x16   :  { %889 = vset.pattern.permute.xlu2 %v1061_v0  ;;  %890 = vset.pattern.permute.xlu0 %v1062_v1  ;;  %v158_v4 = vld [vmem:[#allocation7] sm:$0xf]  ;;  %110 = vst [vmem:[#allocation1 + $0x10] ss:$2 sm:$0xff] %v1127_v2  ;;  %s1063_s2 = smov 17   ;;  %s1064_s4 = smov 16  }
  0x17   :  { %161 = vperm.xlu2 %889, %v158_v4   ;;  %108 = vst [vmem:[#allocation1] ss:$2 sm:$0xff] %v1129_v3  ;;  %v94_v13 = vld [vmem:[#allocation7] sm:$0xf]  ;;  %v1065_v21 = vmov 1   ;;  %s1066_s15 = smov 15  }
  0x18   :  { %v224_v18 = vld [vmem:[#allocation7] sm:$0xf]  ;;  %v1067_v26 = vmov 2   ;;  %s1068_s16 = smov 1   ;;  %v1069_v33 = vmov 3   ;;  %v1070_v39 = vmov 5  }
  0x19   :  { %v290_v24 = vld [vmem:[#allocation7] sm:$0xf]  ;;  %s1071_s17 = smov 127   ;;  %v1072_v41 = vmov 6   ;;  %v1073_v45 = vmov 7   ;;  %s1074_s18 = smov 113  }
  0x1a   :  { %v356_v30 = vld [vmem:[#allocation7] sm:$0xf]  ;;  %s1075_s19 = smov 112   ;;  %v1076_v47 = vmov 8   ;;  %v1163_v49 = vld [vmem:[#allocation10] sm:$0xf] }
  0x1b   :  { %v419_v34 = vld [vmem:[#allocation7] sm:$0xf]  ;;  %897 = vset.pattern.permute.xlu1 %v1076_v47  ;;  %v1161_v48 = vld [vmem:[#allocation5] ss:$2 sm:$0xf]  ;;  %s1077_s20 = smov 111  }
  0x1c   :  { %v486_v40 = vld [vmem:[#allocation7] sm:$0xf]  ;;  %v1165_v50 = vld [vmem:[#allocation5 + $0x1] ss:$2 sm:$0xf]  ;;  %v134_v51 = vadd.s32 4294967295, %v1161_v48 }
  0x1d   :  { %v113_v5 = vld.sshfl [vmem:[#allocation1 + $0x10] sm:$0xff pattern:$0x75316420]  ;;  %v114_v6 = vld.sshfl [vmem:[#allocation1 + $0x18] sm:$0xff pattern:$0x75316420] }
  0x1e   :  { %123 = vrot.lane.b32.xlu0 %v113_v5, %s1063_s2  ;;  %v112_v7 = vld.sshfl [vmem:[#allocation1 + $0x8] sm:$0xff pattern:$0x75316420]  ;;  %183 = vst [vmem:[#allocation1 + $0x10] ss:$2 sm:$0xff] %v1127_v2  ;;  %v1171_v52 = vadd.s32 4294967295, %v1165_v50 }
  0x1f   :  { %121 = vrot.lane.b32.xlu1 %v112_v7, %s1063_s2  ;;  %v111_v8 = vld.sshfl [vmem:[#allocation1] sm:$0xff pattern:$0x75316420]  ;;  %vm135_vm0 = vcmp.ge.s32.totalorder %v134_v51, 0  ;;  %vm136_vm1 = vcmp.lt.s32.totalorder %v134_v51, 16  ;;  %v1190_v59 = vand.u32 127, %v127_v57 }
  0x20   :  { %181 = vst [vmem:[#allocation1] ss:$2 sm:$0xff] %v1129_v3  ;;  %v549_v44 = vld [vmem:[#allocation7] sm:$0xf]  ;;  %vm1175_vm2 = vmand %vm135_vm0, %vm136_vm1  ;;  %vm139_vm3 = vcmp.ge.s32.totalorder %v1171_v52, 0  ;;  %vm141_vm5 = vcmp.lt.s32.totalorder %v1171_v52, 16 }
  0x21   :  { %vm140_vm4 = vmand %vm1175_vm2, %vm139_vm3  ;;  %v1078_v61 = vmov 0.0   ;;  %vm129_vm7 = vcmp.lt.s32.totalorder %v1190_v59, 17  ;;  %vm205_vm8 = vcmp.ge.s32.totalorder %v1165_v50, 0  ;;  %vm207_vm10 = vcmp.lt.s32.totalorder %v1165_v50, 16  ;;  %s1080_s21 = smov [#allocation11]   ;;  %s836_s25 = sshll.u32 %s1454_s5, 4  ;;  %s837_s25 = int_to_ptr.hbm [resolvable:$true] %s836_s25 }
  0x22   :  { %vm142_vm6 = vmand %vm140_vm4, %vm141_vm5  ;;  %vm174_vm11 = vcmask 1043456   ;;  %vm200_vm13 = vcmp.lt.s32.totalorder %v1190_v59, 16  ;;  %vm336_vm4 = vcmp.ge.s32.totalorder %v1161_v48, 0  ;;  %s834_s22 = sshll.u32 %s1080_s21, 4  ;;  %s835_s22 = int_to_ptr.vmem [resolvable:$true] %s834_s22 }
  0x23   :  { %v848_v62 = vsel %vm142_vm6, 1.0, %v1078_v61  ;;  %vm206_vm9 = vmand %vm1175_vm2, %vm205_vm8  ;;  %vm337_vm6 = vcmp.lt.s32.totalorder %v1161_v48, 16 }
  0x24   :  { %v148_v63 = vperm.slane %v848_v62, 2  ;;  %vm208_vm12 = vmand %vm206_vm9, %vm207_vm10 }
  0x25   :  { %v187_v9 = vld.sshfl [vmem:[#allocation1 + $0x18] sm:$0xff pattern:$0x75316420]  ;;  %v186_v10 = vld.sshfl [vmem:[#allocation1 + $0x10] sm:$0xff pattern:$0x75316420] }
  0x26   :  { %125 = vrot.lane.b32.xlu0 %v114_v6, %s1063_s2  ;;  %198 = vrot.lane.b32.xlu2 %v187_v9, %s1064_s4  ;;  %248 = vst [vmem:[#allocation1 + $0x10] ss:$2 sm:$0xff] %v1127_v2 }
  0x27   :  { %119 = vrot.lane.b32.xlu1 %v111_v8, %s1063_s2  ;;  %v185_v11 = vld.sshfl [vmem:[#allocation1 + $0x8] sm:$0xff pattern:$0x75316420]  ;;  %v184_v12 = vld.sshfl [vmem:[#allocation1] sm:$0xff pattern:$0x75316420] }
  0x28   :  { %246 = vst [vmem:[#allocation1] ss:$2 sm:$0xff] %v1129_v3  ;;  %v612_v8 = vld [vmem:[#allocation7] sm:$0xf] }
  0x2d   :  { %v252_v14 = vld.sshfl [vmem:[#allocation1 + $0x18] sm:$0xff pattern:$0x75316420]  ;;  %v251_v15 = vld.sshfl [vmem:[#allocation1 + $0x10] sm:$0xff pattern:$0x75316420] }
  0x2e   :  { %97 = vperm.xlu0 %890, %v94_v13   ;;  %194 = vrot.lane.b32.xlu2 %v185_v11, %s1064_s4  ;;  %314 = vst [vmem:[#allocation1 + $0x10] ss:$2 sm:$0xff] %v1127_v2  ;;  %v146_v11 = vperm.slane %v848_v62, 0 }
  0x2f   :  { %196 = vrot.lane.b32.xlu1 %v186_v10, %s1064_s4  ;;  %v250_v16 = vld.sshfl [vmem:[#allocation1 + $0x8] sm:$0xff pattern:$0x75316420]  ;;  %v249_v17 = vld.sshfl [vmem:[#allocation1] sm:$0xff pattern:$0x75316420] }
  0x30   :  { %312 = vst [vmem:[#allocation1] ss:$2 sm:$0xff] %v1129_v3  ;;  %v149_v10 = vperm.slane %v848_v62, 3 }
  0x35   :  { %v317_v19 = vld.sshfl [vmem:[#allocation1 + $0x10] sm:$0xff pattern:$0x75316420]  ;;  %v318_v20 = vld.sshfl [vmem:[#allocation1 + $0x18] sm:$0xff pattern:$0x75316420] }
  0x36   :  { %891 = vset.pattern.permute.xlu0 %v1065_v21  ;;  %263 = vrot.lane.b32.xlu2 %v252_v14, %s1066_s15  ;;  %380 = vst [vmem:[#allocation1 + $0x10] ss:$2 sm:$0xff] %v1127_v2 }
  0x37   :  { %192 = vrot.lane.b32.xlu1 %v184_v12, %s1064_s4  ;;  %227 = vperm.xlu0 %891, %v224_v18   ;;  %v315_v22 = vld.sshfl [vmem:[#allocation1] sm:$0xff pattern:$0x75316420]  ;;  %v316_v23 = vld.sshfl [vmem:[#allocation1 + $0x8] sm:$0xff pattern:$0x75316420] }
  0x38   :  { %378 = vst [vmem:[#allocation1] ss:$2 sm:$0xff] %v1129_v3  ;;  %v147_v12 = vperm.slane %v848_v62, 1 }
  0x3d   :  { %v384_v25 = vld.sshfl [vmem:[#allocation1 + $0x18] sm:$0xff pattern:$0x75316420]  ;;  %v383_v29 = vld.sshfl [vmem:[#allocation1 + $0x10] sm:$0xff pattern:$0x75316420] }
  0x3e   :  { %259 = vrot.lane.b32.xlu2 %v250_v16, %s1066_s15  ;;  %443 = vst [vmem:[#allocation1 + $0x10] ss:$2 sm:$0xff] %v1127_v2 }
  0x3f   :  { %261 = vrot.lane.b32.xlu1 %v251_v15, %s1066_s15  ;;  %892 = vset.pattern.permute.xlu0 %v1067_v26  ;;  %v381_v27 = vld.sshfl [vmem:[#allocation1] sm:$0xff pattern:$0x75316420]  ;;  %v382_v28 = vld.sshfl [vmem:[#allocation1 + $0x8] sm:$0xff pattern:$0x75316420] }
  0x40   :  { %293 = vperm.xlu0 %892, %v290_v24   ;;  %441 = vst [vmem:[#allocation1] ss:$2 sm:$0xff] %v1129_v3 }
  0x45   :  { %v447_v35 = vld.sshfl [vmem:[#allocation1 + $0x18] sm:$0xff pattern:$0x75316420]  ;;  %v446_v37 = vld.sshfl [vmem:[#allocation1 + $0x10] sm:$0xff pattern:$0x75316420] }
  0x46   :  { %329 = vrot.lane.b32.xlu2 %v318_v20, %s1068_s16  ;;  %510 = vst [vmem:[#allocation1 + $0x10] ss:$2 sm:$0xff] %v1127_v2 }
  0x47   :  { %327 = vrot.lane.b32.xlu1 %v317_v19, %s1068_s16  ;;  %v444_v31 = vld.sshfl [vmem:[#allocation1] sm:$0xff pattern:$0x75316420]  ;;  %v445_v32 = vld.sshfl [vmem:[#allocation1 + $0x8] sm:$0xff pattern:$0x75316420] }
  0x48   :  { %893 = vset.pattern.permute.xlu0 %v1069_v33  ;;  %508 = vst [vmem:[#allocation1] ss:$2 sm:$0xff] %v1129_v3 }
  0x49   :  { %359 = vperm.xlu0 %893, %v356_v30  }
  0x4d   :  { %v514_v42 = vld.sshfl [vmem:[#allocation1 + $0x18] sm:$0xff pattern:$0x75316420]  ;;  %v513_v43 = vld.sshfl [vmem:[#allocation1 + $0x10] sm:$0xff pattern:$0x75316420] }
  0x4e   :  { %325 = vrot.lane.b32.xlu2 %v316_v23, %s1068_s16  ;;  %573 = vst [vmem:[#allocation1 + $0x10] ss:$2 sm:$0xff] %v1127_v2 }
  0x4f   :  { %257 = vrot.lane.b32.xlu1 %v249_v17, %s1066_s15  ;;  %v1151_v36 = vld.sshfl [vmem:[#allocation1 + $0x8] sm:$0xff pattern:$0x75316420]  ;;  %v511_v38 = vld.sshfl [vmem:[#allocation1] sm:$0xff pattern:$0x75316420] }
  0x50   :  { %571 = vst [vmem:[#allocation1] ss:$2 sm:$0xff] %v1129_v3 }
  0x51   :  { %894 = vset.pattern.permute.xlu0 %v1070_v39 }
  0x52   :  { %422 = vperm.xlu0 %894, %v419_v34  }
  0x55   :  { %v577_v54 = vld.sshfl [vmem:[#allocation1 + $0x18] sm:$0xff pattern:$0x75316420]  ;;  %v576_v60 = vld.sshfl [vmem:[#allocation1 + $0x10] sm:$0xff pattern:$0x75316420] }
  0x56   :  { %395 = vrot.lane.b32.xlu2 %v384_v25, %s1071_s17 }
  0x57   :  { %389 = vrot.lane.b32.xlu1 %v381_v27, %s1071_s17  ;;  %v574_v56 = vld.sshfl [vmem:[#allocation1] sm:$0xff pattern:$0x75316420]  ;;  %v575_v7 = vld.sshfl [vmem:[#allocation1 + $0x8] sm:$0xff pattern:$0x75316420] }
  0x5a   :  { %895 = vset.pattern.permute.xlu0 %v1072_v41 }
  0x5b   :  { %489 = vperm.xlu0 %895, %v486_v40  }
  0x5e   :  { %393 = vrot.lane.b32.xlu2 %v383_v29, %s1071_s17  ;;  %v1223_v29 = vadd.s32 1, %v1165_v50 }
  0x5f   :  { %323 = vrot.lane.b32.xlu1 %v315_v22, %s1068_s16 }
  0x60   :  { %vm271_vm14 = vcmp.ge.s32.totalorder %v1223_v29, 0  ;;  %vm273_vm0 = vcmp.lt.s32.totalorder %v1223_v29, 16 }
  0x61   :  { %vm272_vm15 = vmand %vm1175_vm2, %vm271_vm14 }
  0x62   :  { %vm274_vm1 = vmand %vm272_vm15, %vm273_vm0 }
  0x63   :  { %896 = vset.pattern.permute.xlu0 %v1073_v45  ;;  %vm1262_vm2 = vmand %vm336_vm4, %vm337_vm6 }
  0x64   :  { %552 = vperm.xlu0 %896, %v549_v44   ;;  %vm339_vm9 = vmand %vm1262_vm2, %vm139_vm3 }
  0x65   :  { %vm402_vm15 = vmand %vm1262_vm2, %vm271_vm14 }
  0x66   :  { %458 = vrot.lane.b32.xlu2 %v447_v35, %s1074_s18  ;;  %vm403_vm6 = vmand %vm402_vm15, %vm273_vm0 }
  0x67   :  { %452 = vrot.lane.b32.xlu1 %v444_v31, %s1074_s18 }
  0x6c   :  { %898 = vset.pattern.permute.xlu0 %v1061_v0 }
  0x6d   :  { %637 = vperm.xlu0 %898, %v1163_v49  }
  0x6e   :  { %456 = vrot.lane.b32.xlu2 %v446_v37, %s1074_s18  ;;  %v849_v37 = vsel %vm208_vm12, 1.0, %v1078_v61  ;;  %vm340_vm12 = vmand %vm339_vm9, %vm141_vm5  ;;  %vm397_vm9 = vcmp.lt.s32.totalorder %v1190_v59, 127 }
  0x6f   :  { %391 = vrot.lane.b32.xlu1 %v382_v28, %s1071_s17  ;;  %v215_v40 = vperm.slane %v849_v37, 3  ;;  %v213_v44 = vperm.slane %v849_v37, 1 }
  0x71   :  { %v1158_v46 = vpop.permute.xlu2 %161 }
  0x75   :  { %900 = vset.pattern.permute.xlu0 %v1067_v26  ;;  %v1079_v26 = vmov 839922192  }
  0x76   :  { %525 = vrot.lane.b32.xlu2 %v514_v42, %s1075_s19  ;;  %v1218_v27 = vunpack.c.l.s4 %v1079_v26  ;;  %v214_v42 = vperm.slane %v849_v37, 2 }
  0x77   :  { %519 = vrot.lane.b32.xlu1 %v511_v38, %s1075_s19 }
  0x78   :  { %v101_v35 = vunpack.c.0.s8 %v1218_v27 }
  0x7e   :  { %523 = vrot.lane.b32.xlu2 %v513_v43, %s1075_s19  ;;  %v212_v43 = vperm.slane %v849_v37, 0 }
  0x7f   :  { %454 = vrot.lane.b32.xlu1 %v445_v32, %s1074_s18 }
  0x80   :  { %v1173_v53 = vpop.permute.xlu2 %198 }
  0x86   :  { %588 = vrot.lane.b32.xlu2 %v577_v54, %s1077_s20 }
  0x87   :  { %582 = vrot.lane.b32.xlu1 %v574_v56, %s1077_s20 }
  0x88   :  { %v1186_v58 = vpop.permute.xlu2 %194 }
  0x8e   :  { %586 = vrot.lane.b32.xlu2 %v576_v60, %s1077_s20 }
  0x8f   :  { %521 = vrot.lane.b32.xlu1 %v1151_v36, %s1075_s19 }
  0x90   :  { %v124_v0 = vpop.permute.xlu0 %123  ;;  %v1196_v1 = vpop.permute.xlu2 %263 }
  0x91   :  { %v122_v4 = vpop.permute.xlu1 %121 }
  0x92   :  { %v131_v5 = vsel %vm129_vm7, %v122_v4, %v124_v0 }
  0x93   :  { %v156_v6 = vmul.f32 %v148_v63, %v131_v5  ;;  %v850_v63 = vsel %vm274_vm1, 1.0, %v1078_v61 }
  0x95   :  { %v166_v9 = vmul.f32 %v1158_v46, %v156_v6 }
  0x96   :  { %584 = vrot.lane.b32.xlu2 %v575_v7, %s1077_s20 }
  0x97   :  { %615 = vperm.xlu1 %897, %v612_v8  }
  0x98   :  { %v126_v13 = vpop.permute.xlu0 %125  ;;  %v1202_v14 = vpop.permute.xlu2 %259 }
  0x99   :  { %v130_v15 = vsel %vm129_vm7, %v124_v0, %v126_v13  ;;  %v120_v16 = vpop.permute.xlu1 %119 }
  0x9a   :  { %v157_v17 = vmul.f32 %v149_v10, %v130_v15  ;;  %v132_v18 = vsel %vm129_vm7, %v120_v16, %v122_v4  ;;  %v133_v19 = vsel %vm129_vm7, %v126_v13, %v120_v16  ;;  %vm265_vm7 = vcmp.lt.s32.totalorder %v1190_v59, 15 }
  0x9b   :  { %v154_v20 = vmul.f32 %v146_v11, %v133_v19  ;;  %v155_v22 = vmul.f32 %v147_v12, %v132_v18  ;;  %v281_v11 = vperm.slane %v850_v63, 3 }
  0x9c   :  { %v167_v23 = vmul.f32 %v1158_v46, %v157_v17 }
  0x9d   :  { %v164_v24 = vmul.f32 %v1158_v46, %v154_v20  ;;  %v165_v25 = vmul.f32 %v1158_v46, %v155_v22  ;;  %v851_v22 = vsel %vm340_vm12, 1.0, %v1078_v61 }
  0x9e   :  { %v173_v28 = vrot.slane %v167_v23, 4 }
  0x9f   :  { %v172_v30 = vrot.slane %v165_v25, 4  ;;  %899 = vset.pattern.permute.xlu1 %v1065_v21 }
  0xa0   :  { %v98_v31 = vpop.permute.xlu0 %97  ;;  %v176_v32 = vsel %vm174_vm11, %v166_v9, %v173_v28  ;;  %v1228_v34 = vpop.permute.xlu2 %329  ;;  %648 = vperm.xlu1 %899, %v1163_v49   ;;  %v346_v28 = vperm.slane %v851_v22, 2 }
  0xa1   :  { %v175_v36 = vsel %vm174_vm11, %v164_v24, %v172_v30  ;;  %v197_v38 = vpop.permute.xlu1 %196  ;;  %v102_v41 = vperm.slane %v98_v31, %v101_v35  ;;  %v347_v30 = vperm.slane %v851_v22, 3 }
  0xa2   :  { %v201_v39 = vsel %vm200_vm13, %v197_v38, %v1173_v53  ;;  %v202_v21 = vsel %vm200_vm13, %v1186_v58, %v197_v38 }
  0xa3   :  { %v223_v45 = vmul.f32 %v215_v40, %v201_v39  ;;  %v105_v46 = vmul.f32 %v102_v41, %v1127_v2  ;;  %v222_v51 = vmul.f32 %v214_v42, %v202_v21  ;;  %v104_v0 = vmul.f32 %v102_v41, %v1129_v3 }
  0xa5   :  { %v179_v12 = vadd.f32 %v175_v36, %v104_v0 }
  0xa8   :  { %v1259_v57 = vpop.permute.xlu2 %325 }
  0xa9   :  { %v193_v47 = vpop.permute.xlu1 %192  ;;  %v228_v49 = vpop.permute.xlu0 %227 }
  0xaa   :  { %v203_v54 = vsel %vm200_vm13, %v193_v47, %v1186_v58  ;;  %v204_v55 = vsel %vm200_vm13, %v1173_v53, %v193_v47  ;;  %v233_v56 = vmul.f32 %v228_v49, %v223_v45  ;;  %v232_v4 = vmul.f32 %v228_v49, %v222_v51 }
  0xab   :  { %v220_v60 = vmul.f32 %v212_v43, %v204_v55  ;;  %v221_v62 = vmul.f32 %v213_v44, %v203_v54  ;;  %v180_v58 = vadd.f32 %v176_v32, %v105_v46  ;;  %v280_v53 = vperm.slane %v850_v63, 2 }
  0xac   :  { %v239_v5 = vrot.slane %v233_v56, 4  ;;  %vm331_vm13 = vcmp.lt.s32.totalorder %v1190_v59, 1  ;;  %v278_v45 = vperm.slane %v850_v63, 0  ;;  %v279_v46 = vperm.slane %v850_v63, 1 }
  0xad   :  { %v231_v6 = vmul.f32 %v228_v49, %v221_v62  ;;  %v230_v8 = vmul.f32 %v228_v49, %v220_v60 }
  0xae   :  { %v241_v7 = vsel %vm174_vm11, %v232_v4, %v239_v5 }
  0xaf   :  { %v238_v9 = vrot.slane %v231_v6, 4  ;;  %v245_v10 = vadd.f32 %v241_v7, %v180_v58  ;;  %v344_v7 = vperm.slane %v851_v22, 0 }
  0xb0   :  { %v1283_v23 = vpop.permute.xlu2 %395 }
  0xb1   :  { %v240_v3 = vsel %vm174_vm11, %v230_v8, %v238_v9  ;;  %v262_v13 = vpop.permute.xlu1 %261 }
  0xb2   :  { %v244_v15 = vadd.f32 %v240_v3, %v179_v12  ;;  %v266_v16 = vsel %vm265_vm7, %v262_v13, %v1196_v1  ;;  %v267_v17 = vsel %vm265_vm7, %v1202_v14, %v262_v13  ;;  %v294_v18 = vpop.permute.xlu0 %293 }
  0xb3   :  { %v288_v19 = vmul.f32 %v280_v53, %v267_v17  ;;  %v289_v20 = vmul.f32 %v281_v11, %v266_v16  ;;  %v345_v53 = vperm.slane %v851_v22, 1 }
  0xb5   :  { %v299_v24 = vmul.f32 %v294_v18, %v289_v20  ;;  %v298_v25 = vmul.f32 %v294_v18, %v288_v19  ;;  %v465_v20 = vadd.s32 1, %v1161_v48  ;;  %v852_v48 = vsel %vm403_vm6, 1.0, %v1078_v61 }
  0xb7   :  { %v305_v26 = vrot.slane %v299_v24, 4  ;;  %vm466_vm1 = vcmp.ge.s32.totalorder %v465_v20, 0  ;;  %vm467_vm4 = vcmp.lt.s32.totalorder %v465_v20, 16 }
  0xb8   :  { %v1293_v42 = vpop.permute.xlu2 %393 }
  0xb9   :  { %v307_v31 = vsel %vm174_vm11, %v298_v25, %v305_v26  ;;  %v328_v32 = vpop.permute.xlu1 %327  ;;  %v410_v25 = vperm.slane %v852_v48, 3 }
  0xba   :  { %v311_v36 = vadd.f32 %v307_v31, %v245_v10  ;;  %v332_v37 = vsel %vm331_vm13, %v328_v32, %v1228_v34  ;;  %v333_v38 = vsel %vm331_vm13, %v1259_v57, %v328_v32  ;;  %v398_v32 = vsel %vm397_vm9, %v1293_v42, %v1283_v23 }
  0xbb   :  { %v354_v39 = vmul.f32 %v346_v28, %v333_v38  ;;  %v355_v21 = vmul.f32 %v347_v30, %v332_v37  ;;  %v360_v40 = vpop.permute.xlu0 %359  ;;  %v409_v30 = vperm.slane %v852_v48, 2  ;;  %v408_v38 = vperm.slane %v852_v48, 1 }
  0xbd   :  { %v365_v41 = vmul.f32 %v360_v40, %v355_v21  ;;  %v364_v43 = vmul.f32 %v360_v40, %v354_v39 }
  0xbf   :  { %v371_v44 = vrot.slane %v365_v41, 4 }
  0xc0   :  { %v459_v5 = vpop.permute.xlu2 %458 }
  0xc1   :  { %v373_v47 = vsel %vm174_vm11, %v364_v43, %v371_v44  ;;  %v258_v49 = vpop.permute.xlu1 %257 }
  0xc2   :  { %v1296_v51 = vadd.f32 %v373_v47, %v311_v36  ;;  %v268_v54 = vsel %vm265_vm7, %v258_v49, %v1202_v14  ;;  %v269_v55 = vsel %vm265_vm7, %v1196_v1, %v258_v49  ;;  %vm1329_vm7 = vmand %vm466_vm1, %vm467_vm4 }
  0xc3   :  { %v286_v56 = vmul.f32 %v278_v45, %v269_v55  ;;  %v287_v60 = vmul.f32 %v279_v46, %v268_v54  ;;  %vm469_vm2 = vmand %vm1329_vm7, %vm139_vm3 }
  0xc4   :  { %v1334_v24 = vpop.permute.xlu0 %422  ;;  %vm532_vm12 = vmand %vm1329_vm7, %vm205_vm8  ;;  %vm527_vm8 = vcmp.lt.s32.totalorder %v1190_v59, 112 }
  0xc5   :  { %v297_v62 = vmul.f32 %v294_v18, %v287_v60  ;;  %v296_v0 = vmul.f32 %v294_v18, %v286_v56  ;;  %vm533_vm3 = vmand %vm532_vm12, %vm207_vm10 }
  0xc6   :  { %v854_v37 = vsel %vm533_vm3, 1.0, %v1078_v61  ;;  %vm595_vm10 = vmand %vm1329_vm7, %vm271_vm14  ;;  %vm590_vm14 = vcmp.lt.s32.totalorder %v1190_v59, 111 }
  0xc7   :  { %v304_v4 = vrot.slane %v297_v62, 4  ;;  %v540_v45 = vperm.slane %v854_v37, 3  ;;  %vm596_vm15 = vmand %vm595_vm10, %vm273_vm0  ;;  %v539_v62 = vperm.slane %v854_v37, 2  ;;  %vm660_vm0 = vcmask 31744  }
  0xc8   :  { %v457_v9 = vpop.permute.xlu2 %456  ;;  %v855_v29 = vsel %vm596_vm15, 1.0, %v1078_v61 }
  0xc9   :  { %v306_v63 = vsel %vm174_vm11, %v296_v0, %v304_v4  ;;  %v1305_v58 = vpop.permute.xlu1 %389  ;;  %v407_v0 = vperm.slane %v852_v48, 0 }
  0xca   :  { %v310_v6 = vadd.f32 %v306_v63, %v244_v15  ;;  %v401_v28 = vsel %vm397_vm9, %v1283_v23, %v1305_v58 }
  0xcb   :  { %v418_v36 = vmul.f32 %v410_v25, %v401_v28  ;;  %v603_v28 = vperm.slane %v855_v29, 3 }
  0xcd   :  { %v1361_v52 = vpop.permute.xlu0 %489  ;;  %v428_v44 = vmul.f32 %v1334_v24, %v418_v36 }
  0xd0   :  { %v526_v18 = vpop.permute.xlu2 %525 }
  0xd1   :  { %v324_v8 = vpop.permute.xlu1 %323 }
  0xd2   :  { %v334_v14 = vsel %vm331_vm13, %v324_v8, %v1259_v57  ;;  %v335_v1 = vsel %vm331_vm13, %v1228_v34, %v324_v8  ;;  %vm470_vm13 = vmand %vm469_vm2, %vm141_vm5  ;;  %vm460_vm5 = vcmp.lt.s32.totalorder %v1190_v59, 113 }
  0xd3   :  { %v352_v10 = vmul.f32 %v344_v7, %v335_v1  ;;  %v353_v11 = vmul.f32 %v345_v53, %v334_v14  ;;  %v853_v31 = vsel %vm470_vm13, 1.0, %v1078_v61  ;;  %v461_v23 = vsel %vm460_vm5, %v457_v9, %v459_v5 }
  0xd4   :  { %v476_v39 = vperm.slane %v853_v31, 2  ;;  %v477_v21 = vperm.slane %v853_v31, 3  ;;  %v475_v43 = vperm.slane %v853_v31, 1  ;;  %v602_v61 = vperm.slane %v855_v29, 2 }
  0xd5   :  { %v363_v12 = vmul.f32 %v360_v40, %v353_v11  ;;  %v362_v3 = vmul.f32 %v360_v40, %v352_v10  ;;  %v417_v40 = vmul.f32 %v409_v30, %v398_v32  ;;  %v538_v11 = vperm.slane %v854_v37, 1 }
  0xd6   :  { %v484_v55 = vmul.f32 %v476_v39, %v461_v23  ;;  %v553_v8 = vpop.permute.xlu0 %552  ;;  %v600_v23 = vperm.slane %v855_v29, 0 }
  0xd7   :  { %v370_v13 = vrot.slane %v363_v12, 4  ;;  %v427_v60 = vmul.f32 %v1334_v24, %v417_v40 }
  0xd8   :  { %v1319_v57 = vpop.permute.xlu2 %523  ;;  %v494_v14 = vmul.f32 %v1361_v52, %v484_v55 }
  0xd9   :  { %v372_v16 = vsel %vm174_vm11, %v362_v3, %v370_v13  ;;  %v1314_v15 = vpop.permute.xlu1 %452  ;;  %v528_v63 = vsel %vm527_vm8, %v1319_v57, %v526_v18  ;;  %v537_v13 = vperm.slane %v854_v37, 0 }
  0xda   :  { %v1316_v17 = vadd.f32 %v372_v16, %v310_v6  ;;  %v464_v41 = vsel %vm460_vm5, %v459_v5, %v1314_v15  ;;  %v434_v5 = vrot.slane %v428_v44, 4  ;;  %v547_v12 = vmul.f32 %v539_v62, %v528_v63 }
  0xdb   :  { %v485_v56 = vmul.f32 %v477_v21, %v464_v41 }
  0xdc   :  { %v436_v16 = vsel %vm174_vm11, %v427_v60, %v434_v5  ;;  %v557_v32 = vmul.f32 %v553_v8, %v547_v12  ;;  %v646_v12 = vld [vmem:[#allocation8] sm:$0xf] }
  0xdd   :  { %v495_v1 = vmul.f32 %v1361_v52, %v485_v56 }
  0xdf   :  { %v501_v25 = vrot.slane %v495_v1, 4 }
  0xe0   :  { %v1345_v2 = vpop.permute.xlu2 %588 }
  0xe1   :  { %v392_v19 = vpop.permute.xlu1 %391  ;;  %v503_v44 = vsel %vm174_vm11, %v494_v14, %v501_v25 }
  0xe2   :  { %v399_v50 = vsel %vm397_vm9, %v392_v19, %v1293_v42  ;;  %v400_v6 = vsel %vm397_vm9, %v1305_v58, %v392_v19 }
  0xe3   :  { %v416_v47 = vmul.f32 %v408_v38, %v399_v50  ;;  %v415_v3 = vmul.f32 %v407_v0, %v400_v6 }
  0xe5   :  { %v426_v53 = vmul.f32 %v1334_v24, %v416_v47 }
  0xe7   :  { %v433_v20 = vrot.slane %v426_v53, 4 }
  0xe8   :  { %v587_v54 = vpop.permute.xlu2 %586 }
  0xe9   :  { %v1325_v34 = vpop.permute.xlu1 %519  ;;  %v591_v40 = vsel %vm590_vm14, %v587_v54, %v1345_v2 }
  0xea   :  { %v531_v49 = vsel %vm527_vm8, %v526_v18, %v1325_v34  ;;  %v610_v56 = vmul.f32 %v602_v61, %v591_v40 }
  0xeb   :  { %v548_v7 = vmul.f32 %v540_v45, %v531_v49 }
  0xed   :  { %v558_v18 = vmul.f32 %v553_v8, %v548_v7 }
  0xef   :  { %v564_v39 = vrot.slane %v558_v18, 4 }
  0xf0   :  { %v585_v37 = vpop.permute.xlu2 %584 }
  0xf1   :  { %v455_v26 = vpop.permute.xlu1 %454  ;;  %v592_v21 = vsel %vm590_vm14, %v585_v37, %v587_v54 }
  0xf2   :  { %v462_v42 = vsel %vm460_vm5, %v455_v26, %v457_v9  ;;  %v474_v9 = vperm.slane %v853_v31, 0  ;;  %v463_v10 = vsel %vm460_vm5, %v1314_v15, %v455_v26  ;;  %v601_v26 = vperm.slane %v855_v29, 1 }
  0xf3   :  { %v483_v4 = vmul.f32 %v475_v43, %v462_v42  ;;  %v425_v31 = vmul.f32 %v1334_v24, %v415_v3 }
  0xf4   :  { %v482_v22 = vmul.f32 %v474_v9, %v463_v10  ;;  %v609_v42 = vmul.f32 %v601_v26, %v592_v21 }
  0xf5   :  { %v493_v58 = vmul.f32 %v1361_v52, %v483_v4 }
  0xf6   :  { %v492_v24 = vmul.f32 %v1361_v52, %v482_v22  ;;  %v566_v52 = vsel %vm174_vm11, %v557_v32, %v564_v39 }
  0xf7   :  { %v500_v36 = vrot.slane %v493_v58, 4 }
  0xf9   :  { %v583_v46 = vpop.permute.xlu1 %582  ;;  %v502_v45 = vsel %vm174_vm11, %v492_v24, %v500_v36 }
  0xfa   :  { %v593_v41 = vsel %vm590_vm14, %v583_v46, %v585_v37  ;;  %v795_v37 = vld [vmem:[#allocation10] sm:$0xf] }
  0xfb   :  { %v608_v54 = vmul.f32 %v600_v23, %v593_v41  ;;  %798 = vperm.xlu0 %900, %v795_v37  }
 0x101   :  { %v522_v19 = vpop.permute.xlu1 %521 }
 0x102   :  { %v529_v48 = vsel %vm527_vm8, %v522_v19, %v1319_v57  ;;  %v530_v15 = vsel %vm527_vm8, %v1325_v34, %v522_v19  ;;  %v594_v57 = vsel %vm590_vm14, %v1345_v2, %v583_v46  ;;  %v435_v34 = vsel %vm174_vm11, %v425_v31, %v433_v20  ;;  %v638_v46 = vpop.permute.xlu0 %637 }
 0x103   :  { %v546_v30 = vmul.f32 %v538_v11, %v529_v48  ;;  %v545_v38 = vmul.f32 %v537_v13, %v530_v15  ;;  %v611_v47 = vmul.f32 %v603_v28, %v594_v57  ;;  %v439_v55 = vadd.f32 %v435_v34, %v1316_v17  ;;  %901 = vset.pattern.permute.xlu0 %v1069_v33 }
 0x104   :  { %v440_v2 = vadd.f32 %v436_v16, %v1296_v51  ;;  %v642_v29 = vperm.slane %v638_v46, %v101_v35  ;;  %806 = vperm.xlu0 %901, %v795_v37  }
 0x105   :  { %v556_v50 = vmul.f32 %v553_v8, %v546_v30  ;;  %v555_v49 = vmul.f32 %v553_v8, %v545_v38  ;;  %v506_v4 = vadd.f32 %v502_v45, %v439_v55 }
 0x106   :  { %v507_v5 = vadd.f32 %v503_v44, %v440_v2 }
 0x107   :  { %v563_v43 = vrot.slane %v556_v50, 4 }
 0x108   :  { %v570_v17 = vadd.f32 %v566_v52, %v507_v5 }
 0x109   :  { %v616_v60 = vpop.permute.xlu1 %615  ;;  %v565_v0 = vsel %vm174_vm11, %v555_v49, %v563_v43 }
 0x10a   :  { %v619_v62 = vmul.f32 %v616_v60, %v609_v42  ;;  %v621_v59 = vmul.f32 %v616_v60, %v611_v47  ;;  %v618_v63 = vmul.f32 %v616_v60, %v608_v54  ;;  %v620_v6 = vmul.f32 %v616_v60, %v610_v56 }
 0x10b   :  { %v569_v8 = vadd.f32 %v565_v0, %v506_v4 }
 0x10c   :  { %v626_v7 = vrot.slane %v619_v62, 4  ;;  %v627_v53 = vrot.slane %v621_v59, 4 }
 0x10e   :  { %v628_v51 = vsel %vm174_vm11, %v618_v63, %v626_v7  ;;  %v629_v9 = vsel %vm174_vm11, %v620_v6, %v627_v53 }
 0x10f   :  { %v632_v14 = vadd.f32 %v628_v51, %v569_v8  ;;  %v633_v1 = vadd.f32 %v629_v9, %v570_v17 }
 0x111   :  { %v644_v10 = vadd.f32 %v642_v29, %v632_v14  ;;  %v645_v11 = vadd.f32 %v642_v29, %v633_v1 }
 0x112   :  { %v649_v13 = vpop.permute.xlu1 %648 }
 0x113   :  { %653 = vst [vmem:[#allocation1] ss:$2 sm:$0xff] %v644_v10 }
 0x114   :  { %655 = vst [vmem:[#allocation1 + $0x10] ss:$2 sm:$0xff] %v645_v11 }
 0x11a   :  { %v656_v3 = vld.sshfl [vmem:[#allocation1] sm:$0xff pattern:$0x75316420]  ;;  %v657_v58 = vld.sshfl [vmem:[#allocation1 + $0x8] sm:$0xff pattern:$0x75316420] }
 0x11b   :  { %856 = vmatpush.msk.msra.mxu0 %vm174_vm11, %v656_v3  ;;  %858 = vmatpush.msk.msra.mxu1 %vm174_vm11, %v657_v58  ;;  %v658_v27 = vld.sshfl [vmem:[#allocation1 + $0x10] sm:$0xff pattern:$0x75316420]  ;;  %v659_v35 = vld.sshfl [vmem:[#allocation1 + $0x18] sm:$0xff pattern:$0x75316420] }
 0x11c   :  { %860 = vmatpush.msk.msra.mxu2 %vm174_vm11, %v658_v27  ;;  %862 = vmatpush.msk.msra.mxu3 %vm174_vm11, %v659_v35 }
 0x11d   :  { %861 = vmatmul.msk.f32.vlgmr.msra.gmra.mxu2 %vm660_vm0, %v646_v12  ;;  %863 = vmatmul.msk.f32.vlgmr.msra.gmra.mxu3 %vm660_vm0, %v646_v12 }
 0x11e   :  { %857 = vmatmul.msk.f32.vlgmr.msra.gmra.mxu0 %vm660_vm0, %v646_v12  ;;  %859 = vmatmul.msk.f32.vlgmr.msra.gmra.mxu1 %vm660_vm0, %v646_v12 }
 0x16d   :  { %v799_v62 = vpop.permute.xlu0 %798 }
 0x176   :  { %v807_v53 = vpop.permute.xlu0 %806 }
 0x19b   :  { %v689_v16 = vpop.f32.mrf.mxu0  ;;  %v709_v18 = vpop.f32.mrf.mxu1 }
 0x19c   :  { %v690_v61 = vadd.f32 %v689_v16, %v649_v13  ;;  %v710_v19 = vadd.f32 %v709_v18, %v649_v13 }
 0x19e   :  { %v752_v20 = vsel %vm174_vm11, %v690_v61, 0.0  ;;  %v753_v22 = vsel %vm174_vm11, %v710_v19, 0.0 }
 0x19f   :  { %v754_v48 = vadd.f32 %v753_v22, %v752_v20 }
 0x1a0   :  { %v729_v15 = vpop.f32.mrf.mxu2  ;;  %v749_v25 = vpop.f32.mrf.mxu3 }
 0x1a1   :  { %v730_v26 = vadd.f32 %v729_v15, %v649_v13  ;;  %v750_v28 = vadd.f32 %v749_v25, %v649_v13 }
 0x1a3   :  { %v755_v30 = vsel %vm174_vm11, %v730_v26, 0.0  ;;  %v757_v32 = vsel %vm174_vm11, %v750_v28, 0.0 }
 0x1a4   :  { %v756_v31 = vadd.f32 %v755_v30, %v754_v48 }
 0x1a6   :  { %v758_v36 = vadd.f32 %v757_v32, %v756_v31 }
 0x1a8   :  { %759 = vadd.xlane.f32.xlu2 %v758_v36 }
 0x21b   :  { %v760_v38 = vpop.xlane.xlu2 %759 }
 0x21c   :  { %v761_v39 = vmul.f32 0.001953125, %v760_v38 }
 0x21e   :  { %v762_v21 = vsub.f32 %v690_v61, %v761_v39  ;;  %v763_v57 = vsub.f32 %v710_v19, %v761_v39  ;;  %v764_v50 = vsub.f32 %v730_v26, %v761_v39  ;;  %v765_v34 = vsub.f32 %v750_v28, %v761_v39 }
 0x220   :  { %v766_v40 = vmul.f32 %v762_v21, %v762_v21  ;;  %v767_v24 = vmul.f32 %v763_v57, %v763_v57  ;;  %v768_v23 = vmul.f32 %v764_v50, %v764_v50  ;;  %v769_v41 = vmul.f32 %v765_v34, %v765_v34 }
 0x222   :  { %v770_v43 = vsel %vm174_vm11, %v766_v40, 0.0  ;;  %v771_v44 = vsel %vm174_vm11, %v767_v24, 0.0  ;;  %v773_v42 = vsel %vm174_vm11, %v768_v23, 0.0  ;;  %v775_v33 = vsel %vm174_vm11, %v769_v41, 0.0 }
 0x223   :  { %v772_v45 = vadd.f32 %v771_v44, %v770_v43 }
 0x225   :  { %v774_v47 = vadd.f32 %v773_v42, %v772_v45 }
 0x227   :  { %v776_v49 = vadd.f32 %v775_v33, %v774_v47 }
 0x229   :  { %777 = vadd.xlane.f32.xlu1 %v776_v49 }
 0x29c   :  { %v778_v55 = vpop.xlane.xlu1 %777 }
 0x29d   :  { %v779_v56 = vmul.f32 0.001953125, %v778_v55 }
 0x29f   :  { %v780_v60 = vadd.f32 4e-05, %v779_v56 }
 0x2a1   :  { %902 = vrsqrt.f32 %v780_v60  ;;  %vm787_vm4 = vweird.f32 %v780_v60 }
 0x2a7   :  { %v903_v2 = vpop.eup %902 }
 0x2a8   :  { %v782_v52 = vmul.f32 %v903_v2, %v780_v60  ;;  %vm788_vm1 = vweird.f32 %v903_v2 }
 0x2a9   :  { %vm789_vm6 = vmor %vm787_vm4, %vm788_vm1 }
 0x2aa   :  { %v783_v54 = vmul.f32 %v903_v2, %v782_v52 }
 0x2ac   :  { %v784_v59 = vmul.f32 0.5, %v783_v54 }
 0x2ae   :  { %v785_v46 = vsub.f32 1.5, %v784_v59 }
 0x2b0   :  { %v786_v0 = vmul.f32 %v903_v2, %v785_v46 }
 0x2b2   :  { %v790_v4 = vsel %vm789_vm6, %v903_v2, %v786_v0 }
 0x2b3   :  { %v791_v5 = vmul.f32 %v790_v4, %v762_v21  ;;  %v792_v63 = vmul.f32 %v790_v4, %v763_v57  ;;  %v793_v6 = vmul.f32 %v790_v4, %v764_v50  ;;  %v794_v7 = vmul.f32 %v790_v4, %v765_v34 }
 0x2b5   :  { %v801_v8 = vmul.f32 %v799_v62, %v791_v5  ;;  %v802_v17 = vmul.f32 %v799_v62, %v792_v63  ;;  %v803_v29 = vmul.f32 %v799_v62, %v793_v6  ;;  %v804_v51 = vmul.f32 %v799_v62, %v794_v7 }
 0x2b7   :  { %v809_v9 = vadd.f32 %v807_v53, %v801_v8  ;;  %v810_v14 = vadd.f32 %v807_v53, %v802_v17  ;;  %v811_v1 = vadd.f32 %v807_v53, %v803_v29  ;;  %v812_v10 = vadd.f32 %v807_v53, %v804_v51 }
 0x2b9   :  { %v814_v11 = vmax.f32 %v810_v14, 0.0  ;;  %v816_v12 = vmax.f32 %v812_v10, 0.0  ;;  %v813_v3 = vmax.f32 %v809_v9, 0.0  ;;  %v815_v58 = vmax.f32 %v811_v1, 0.0 }
 0x2bb   :  { %v821_v27 = vrot.slane %v814_v11, 4  ;;  %v822_v35 = vrot.slane %v816_v12, 4 }
 0x2bd   :  { %v823_v13 = vsel %vm174_vm11, %v813_v3, %v821_v27  ;;  %v824_v16 = vsel %vm174_vm11, %v815_v58, %v822_v35 }
 0x2be   :  { %827 = vst [vmem:[#allocation11] sm:$0xff] %v823_v13 }
 0x2bf   :  { %828 = vst [vmem:[#allocation11 + $0x8] sm:$0xff] %v824_v16 }
 0x2c0   :  { %839 = dma.vmem_to_hbm [thread:$0]  %s835_s22, 256, %s837_s25, [#allocation4]  }
 0x2c1   :  { %1054 = dma.done.wait [#allocation4], 256  }
 0x2c2   :  { %1055 = vsyncadd [#allocation4], 4294967040 }
 0x2c3   :  { %844 = vsyncpa [#allocation3], 1 }
 0x2c4   :  { %845 = vsyncpa [#allocation6], 1 }
 0x2c5   :  { %846 = vsyncpa [#allocation9], 1 }
 0x2c6   :  { %847 = vsyncpa [#allocation4], 1 }

</bundles_post_ra>
